<compile_context>
chip_gen: v7x
topology: tpu7x:2x2x1
jax: 0.10.0
libtpu: 0.0.40
codegen_flags: <defaults>
</compile_context>

<pallas_src>
import functools

import jax
import jax.numpy as jnp
from jax import lax
from jax.experimental import pallas as pl
from jax.experimental.pallas import tpu as pltpu

_EPS = 1e-6
_LANES = 128
_C_BLOCK = 128              # channel-block rows when C is large
_C_BLOCK_THRESHOLD = 256    # block channels only beyond this many channels
_MAX_UNROLL_ELEMS = 256 * 1024   # caps the statically-unrolled inner loop size


@functools.lru_cache(maxsize=1)
def _chip_config():
    """Returns (two_tensorcores, tile_bytes_per_input_per_buffer, vmem_limit_bytes)."""
    kind = ""
    try:
        kind = jax.devices()[0].device_kind.lower()
    except Exception:
        pass
    if "v7" in kind:                      # v7x: 64 MiB VMEM per TC, 2 TCs/chip
        return True, 4 * 1024 * 1024, 40 * 1024 * 1024
    if "v4" in kind or "v5p" in kind:     # megacore chips (2 TCs), 128 MiB VMEM
        return True, 6 * 1024 * 1024, 64 * 1024 * 1024
    if "v5" in kind or "v6" in kind:      # v5e / v6e: 1 TC, 128 MiB VMEM
        return False, 6 * 1024 * 1024, 64 * 1024 * 1024
    return False, 2 * 1024 * 1024, 32 * 1024 * 1024   # unknown: conservative


def _make_kernel(*, N, TS, CH, KB, C_blk, n_chunks):
    """Kernel accumulating per-channel dot / |fr|^2 / |ft|^2 over the spatial axis.

    fr_ref / ft_ref : (C_blk, TS) tile of the (C, N) feature maps
    out_ref         : (1, 1, 3, C_blk, CH) lane-dense partials for this (p, cb)
    acc_ref         : (3, C_blk, CH) f32 scratch accumulator (persists over k)
    """

    def kernel(fr_ref, ft_ref, out_ref, acc_ref):
        p = pl.program_id(0)
        k = pl.program_id(2)

        @pl.when(k == 0)
        def _init():
            acc_ref[...] = jnp.zeros_like(acc_ref)

        # Global (unclamped) spatial block index -> number of valid columns in
        # this tile.  Handles both the ragged spatial tail and redundant steps
        # of the 2-chunk split (n_valid == 0 there).
        s_idx = p * KB + k
        n_valid = jnp.clip(N - s_idx * TS, 0, TS)

        def accumulate(masked):
            if masked:
                col_ids = lax.broadcasted_iota(jnp.int32, (C_blk, CH), 1)
            # Static, 128-aligned slices; each slab of fr/ft is loaded exactly
            # once and all three reductions are accumulated together.
            for j in range(n_chunks):
                lo = j * CH
                a = fr_ref[:, lo:lo + CH].astype(jnp.float32)
                b = ft_ref[:, lo:lo + CH].astype(jnp.float32)
                if masked:
                    lim = jnp.clip(n_valid - lo, 0, CH)
                    keep = col_ids < lim
                    a = jnp.where(keep, a, 0.0)
                    b = jnp.where(keep, b, 0.0)
                acc_ref[0] += a * b
                acc_ref[1] += a * a
                acc_ref[2] += b * b

        @pl.when(n_valid == TS)          # interior block: no masking in hot loop
        def _full():
            accumulate(False)

        @pl.when(n_valid < TS)           # ragged tail / redundant chunk step
        def _partial():
            accumulate(True)

        @pl.when(k == KB - 1)
        def _finalize():
            out_ref[0, 0] = acc_ref[...]

    return kernel


def _cosine_loss_plain(fr, ft):
    """Plain-JAX cosine loss on (C, N) inputs (fallback + reference)."""
    fr = fr.astype(jnp.float32)
    ft = ft.astype(jnp.float32)
    dot = jnp.sum(fr * ft, axis=1)
    n1 = jnp.sum(fr * fr, axis=1)
    n2 = jnp.sum(ft * ft, axis=1)
    denom = jnp.maximum(jnp.sqrt(n1) * jnp.sqrt(n2), _EPS)
    return (1.0 - jnp.mean(dot / denom)).astype(jnp.float32)


@functools.partial(jax.jit,
                   static_argnames=("img_in", "max_block_elems", "min_kernel_elems"))
def feature_loss(feature_rgb, feature_target, img_in=True,
                 max_block_elems=None, min_kernel_elems=64 * 1024):
    # TODO(synk): per_pixel=True (per-pixel cosine over the channel dim) is not
    # implemented; this reproduces the module defaults (per_pixel=False).
    if img_in:
        C = feature_rgb.shape[0]
        fr = feature_rgb.reshape(C, -1)        # free view, no extra HBM pass
        ft = feature_target.reshape(C, -1)
    else:
        fr, ft = feature_rgb, feature_target

    C, N = fr.shape
    itemsize = fr.dtype.itemsize

    # Tiny inputs: the kernel would be pure fixed overhead -> plain JAX.
    if C * N < min_kernel_elems:
        return _cosine_loss_plain(fr, ft)

    two_tc, tile_bytes, vmem_limit = _chip_config()
    if max_block_elems is None:
        max_block_elems = max(1, tile_bytes // itemsize)

    # --- channel blocking (keeps DMA runs long & VMEM bounded for large C) ---
    C_blk = _C_BLOCK if C > _C_BLOCK_THRESHOLD else C
    n_cb = pl.cdiv(C, C_blk)

    # --- inner-slab lane width & spatial tile size ---------------------------
    CH = min(512, max(_LANES, (4096 // C_blk) // _LANES * _LANES))
    CH = min(CH, pl.cdiv(N, _LANES) * _LANES)          # never wider than N
    sub_rows = max(1, 8 * 4 // itemsize)               # sublane packing of dtype
    rows = max(C_blk, sub_rows)                        # VMEM rows incl. padding
    n_chunk_cap = max(8, min(64, _MAX_UNROLL_ELEMS // (C_blk * CH)))
    ts_budget = max(CH, (max_block_elems // rows) // CH * CH)
    TS = min(ts_budget, n_chunk_cap * CH, pl.cdiv(N, CH) * CH)
    n_chunks = TS // CH
    SB_total = pl.cdiv(N, TS)              # spatial blocks (last may be ragged)

    # --- split the spatial reduction across TensorCores only where it helps --
    P = 2 if (two_tc and SB_total >= 8) else 1
    KB = pl.cdiv(SB_total, P)

    def in_map(p, cb, k):
        # Clamp redundant tail steps (P*KB > SB_total) to a legal block; those
        # steps are fully masked in-kernel so they contribute nothing.
        s = jnp.minimum(p * KB + k, SB_total - 1)
        return (cb, s)

    kernel = _make_kernel(N=N, TS=TS, CH=CH, KB=KB, C_blk=C_blk, n_chunks=n_chunks)

    partials = pl.pallas_call(
        kernel,
        out_shape=jax.ShapeDtypeStruct((P, n_cb, 3, C_blk, CH), jnp.float32),
        grid_spec=pltpu.PrefetchScalarGridSpec(
            num_scalar_prefetch=0,
            grid=(P, n_cb, KB),
            in_specs=[
                pl.BlockSpec((C_blk, TS), in_map),
                pl.BlockSpec((C_blk, TS), in_map),
            ],
            out_specs=pl.BlockSpec((1, 1, 3, C_blk, CH),
                                   lambda p, cb, k: (p, cb, 0, 0, 0)),
            scratch_shapes=[pltpu.VMEM((3, C_blk, CH), jnp.float32)],
        ),
        compiler_params=pltpu.CompilerParams(
            # TODO(synk): on v7x, pltpu.CORE_PARALLEL on the leading axis may be
            # needed to actually shard the P=2 chunks across both TensorCores.
            dimension_semantics=("parallel", "arbitrary", "arbitrary"),
            vmem_limit_bytes=vmem_limit,
        ),
        cost_estimate=pl.CostEstimate(
            flops=6 * C * N,
            transcendentals=0,
            bytes_accessed=2 * C * N * itemsize + P * n_cb * 3 * C_blk * CH * 4,
        ),
    )(fr, ft)

    # O(C) finalize in plain JAX: combine chunk/lane partials, then cosine.
    sums = jnp.sum(partials, axis=(0, 4))                    # (n_cb, 3, C_blk)
    sums = jnp.transpose(sums, (1, 0, 2)).reshape(3, n_cb * C_blk)[:, :C]
    dot, n1, n2 = sums[0], sums[1], sums[2]
    denom = jnp.maximum(jnp.sqrt(n1) * jnp.sqrt(n2), _EPS)
    return 1.0 - jnp.mean(dot / denom)


def _reference_loss(feature_rgb, feature_target):
    C = feature_rgb.shape[0]
    return _cosine_loss_plain(feature_rgb.reshape(C, -1),
                              feature_target.reshape(C, -1))


def _check(name, out, ref, atol=1e-5, rtol=1e-4):
    out = jax.block_until_ready(out)
    ok = jnp.allclose(out, ref, atol=atol, rtol=rtol)
    assert bool(ok), (name, float(out), float(ref))


if __name__ == "__main__":
    key = jax.random.PRNGKey(0)
    k = jax.random.split(key, 10)

    # 1) module-default small CHW feature map; kernel forced (single exact block)
    fr = jax.random.normal(k[0], (4, 16, 16), dtype=jnp.float32)
    ft = jax.random.normal(k[1], (4, 16, 16), dtype=jnp.float32)
    _check("small", feature_loss(fr, ft, min_kernel_elems=0),
           _reference_loss(fr, ft))

    # 2) multi-block spatial accumulation (small tile override -> 2 k-steps)
    fr2 = jax.random.normal(k[2], (8, 64, 64), dtype=jnp.float32)
    ft2 = jax.random.normal(k[3], (8, 64, 64), dtype=jnp.float32)
    _check("multiblock",
           feature_loss(fr2, ft2, max_block_elems=16 * 1024, min_kernel_elems=0),
           _reference_loss(fr2, ft2))

    # 3) ragged spatial size (N = 57*93 = 5301) + many blocks + masked tail
    fr3 = jax.random.normal(k[4], (12, 57, 93), dtype=jnp.float32)
    ft3 = jax.random.normal(k[5], (12, 57, 93), dtype=jnp.float32)
    _check("ragged",
           feature_loss(fr3, ft3, max_block_elems=4 * 1024, min_kernel_elems=0),
           _reference_loss(fr3, ft3))

    # 4) large channel count -> channel-blocking path (ragged last channel block)
    fr4 = jax.random.normal(k[6], (320, 16, 16), dtype=jnp.float32)
    ft4 = jax.random.normal(k[7], (320, 16, 16), dtype=jnp.float32)
    _check("channel_blocked", feature_loss(fr4, ft4, min_kernel_elems=0),
           _reference_loss(fr4, ft4))

    # 5) bf16 features streamed natively (half the HBM bytes)
    fr5 = jax.random.normal(k[8], (8, 64, 64), dtype=jnp.float32).astype(jnp.bfloat16)
    ft5 = jax.random.normal(k[9], (8, 64, 64), dtype=jnp.float32).astype(jnp.bfloat16)
    _check("bf16", feature_loss(fr5, ft5, min_kernel_elems=0),
           _reference_loss(fr5, ft5))

    # 6) tiny-input fallback path (no pallas_call)
    _check("fallback", feature_loss(fr, ft), _reference_loss(fr, ft))

    print("KERNEL_OK")
</pallas_src>

<mosaic_0001>
module attributes {stable_mosaic.version = 11 : i64} {
  func.func @kernel(%arg0: i32, %arg1: i32, %arg2: i32, %arg3: memref<4x256xf32, #tpu.memory_space<vmem>>, %arg4: memref<4x256xf32, #tpu.memory_space<vmem>>, %arg5: memref<1x1x3x4x256xf32, #tpu.memory_space<vmem>>, %arg6: memref<3x4x256xf32, #tpu.memory_space<vmem>>) attributes {dimension_semantics = [#tpu.dimension_semantics<parallel>, #tpu.dimension_semantics<arbitrary>, #tpu.dimension_semantics<arbitrary>], iteration_bounds = array<i64: 1, 1, 1>, scalar_prefetch = 0 : i64, scratch_operands = 1 : i64, tpu.core_type = #tpu.core_type<tc>, window_params = [{transform_indices = @transform_0, window_bounds = array<i64: 4, 256>}, {transform_indices = @transform_1, window_bounds = array<i64: 4, 256>}, {transform_indices = @transform_2, window_bounds = array<i64: 1, 1, 3, 4, 256>}]} {
    %c0_i32 = arith.constant 0 : i32
    %0 = arith.cmpi eq, %arg2, %c0_i32 : i32
    %1 = arith.extui %0 : i1 to i32
    %c0_i32_0 = arith.constant 0 : i32
    %2 = arith.cmpi ne, %1, %c0_i32_0 : i32
    scf.if %2 {
      %cst = arith.constant 0.000000e+00 : f32
      %18 = vector.broadcast %cst : f32 to vector<3x4x256xf32>
      %c0 = arith.constant 0 : index
      %c0_10 = arith.constant 0 : index
      %c0_11 = arith.constant 0 : index
      %19 = vector.load %arg6[%c0, %c0_10, %c0_11] : memref<3x4x256xf32, #tpu.memory_space<vmem>>, vector<3x4x256xf32>
      tpu.vector_store %arg6[%c0, %c0_10, %c0_11], %18 {strides = array<i32>} : memref<3x4x256xf32, #tpu.memory_space<vmem>>, vector<3x4x256xf32>,
    } else {
    }
    %c1_i32 = arith.constant 1 : i32
    %3 = arith.muli %arg0, %c1_i32 : i32
    %4 = arith.addi %3, %arg2 : i32
    %c256_i32 = arith.constant 256 : i32
    %5 = arith.muli %4, %c256_i32 : i32
    %c256_i32_1 = arith.constant 256 : i32
    %6 = arith.subi %c256_i32_1, %5 : i32
    %c0_i32_2 = arith.constant 0 : i32
    %c256_i32_3 = arith.constant 256 : i32
    %7 = arith.maxsi %c0_i32_2, %6 : i32
    %8 = arith.minsi %c256_i32_3, %7 : i32
    %c256_i32_4 = arith.constant 256 : i32
    %9 = arith.cmpi eq, %8, %c256_i32_4 : i32
    %10 = arith.extui %9 : i1 to i32
    %c0_i32_5 = arith.constant 0 : i32
    %11 = arith.cmpi ne, %10, %c0_i32_5 : i32
    scf.if %11 {
      %c0 = arith.constant 0 : index
      %c0_10 = arith.constant 0 : index
      %18 = vector.load %arg3[%c0, %c0_10] : memref<4x256xf32, #tpu.memory_space<vmem>>, vector<4x256xf32>
      %c0_11 = arith.constant 0 : index
      %c0_12 = arith.constant 0 : index
      %19 = vector.load %arg4[%c0_11, %c0_12] : memref<4x256xf32, #tpu.memory_space<vmem>>, vector<4x256xf32>
      %c0_13 = arith.constant 0 : index
      %c0_14 = arith.constant 0 : index
      %c0_15 = arith.constant 0 : index
      %20 = vector.load %arg6[%c0_13, %c0_14, %c0_15] : memref<3x4x256xf32, #tpu.memory_space<vmem>>, vector<1x4x256xf32>
      %21 = vector.shape_cast %20 : vector<1x4x256xf32> to vector<4x256xf32>
      %22 = arith.mulf %18, %19 : vector<4x256xf32>
      %23 = arith.addf %21, %22 : vector<4x256xf32>
      %c0_16 = arith.constant 0 : index
      %c0_17 = arith.constant 0 : index
      %c0_18 = arith.constant 0 : index
      %24 = vector.load %arg6[%c0_16, %c0_17, %c0_18] : memref<3x4x256xf32, #tpu.memory_space<vmem>>, vector<1x4x256xf32>
      %25 = vector.shape_cast %24 : vector<1x4x256xf32> to vector<4x256xf32>
      %26 = vector.shape_cast %23 : vector<4x256xf32> to vector<1x4x256xf32>
      tpu.vector_store %arg6[%c0_16, %c0_17, %c0_18], %26 {strides = array<i32>} : memref<3x4x256xf32, #tpu.memory_space<vmem>>, vector<1x4x256xf32>,
      %c1 = arith.constant 1 : index
      %c0_19 = arith.constant 0 : index
      %c0_20 = arith.constant 0 : index
      %27 = vector.load %arg6[%c1, %c0_19, %c0_20] : memref<3x4x256xf32, #tpu.memory_space<vmem>>, vector<1x4x256xf32>
      %28 = vector.shape_cast %27 : vector<1x4x256xf32> to vector<4x256xf32>
      %29 = arith.mulf %18, %18 : vector<4x256xf32>
      %30 = arith.addf %28, %29 : vector<4x256xf32>
      %c1_21 = arith.constant 1 : index
      %c0_22 = arith.constant 0 : index
      %c0_23 = arith.constant 0 : index
      %31 = vector.load %arg6[%c1_21, %c0_22, %c0_23] : memref<3x4x256xf32, #tpu.memory_space<vmem>>, vector<1x4x256xf32>
      %32 = vector.shape_cast %31 : vector<1x4x256xf32> to vector<4x256xf32>
      %33 = vector.shape_cast %30 : vector<4x256xf32> to vector<1x4x256xf32>
      tpu.vector_store %arg6[%c1_21, %c0_22, %c0_23], %33 {strides = array<i32>} : memref<3x4x256xf32, #tpu.memory_space<vmem>>, vector<1x4x256xf32>,
      %c2 = arith.constant 2 : index
      %c0_24 = arith.constant 0 : index
      %c0_25 = arith.constant 0 : index
      %34 = vector.load %arg6[%c2, %c0_24, %c0_25] : memref<3x4x256xf32, #tpu.memory_space<vmem>>, vector<1x4x256xf32>
      %35 = vector.shape_cast %34 : vector<1x4x256xf32> to vector<4x256xf32>
      %36 = arith.mulf %19, %19 : vector<4x256xf32>
      %37 = arith.addf %35, %36 : vector<4x256xf32>
      %c2_26 = arith.constant 2 : index
      %c0_27 = arith.constant 0 : index
      %c0_28 = arith.constant 0 : index
      %38 = vector.load %arg6[%c2_26, %c0_27, %c0_28] : memref<3x4x256xf32, #tpu.memory_space<vmem>>, vector<1x4x256xf32>
      %39 = vector.shape_cast %38 : vector<1x4x256xf32> to vector<4x256xf32>
      %40 = vector.shape_cast %37 : vector<4x256xf32> to vector<1x4x256xf32>
      tpu.vector_store %arg6[%c2_26, %c0_27, %c0_28], %40 {strides = array<i32>} : memref<3x4x256xf32, #tpu.memory_space<vmem>>, vector<1x4x256xf32>,
    } else {
    }
    %c256_i32_6 = arith.constant 256 : i32
    %12 = arith.cmpi slt, %8, %c256_i32_6 : i32
    %13 = arith.extui %12 : i1 to i32
    %c0_i32_7 = arith.constant 0 : i32
    %14 = arith.cmpi ne, %13, %c0_i32_7 : i32
    scf.if %14 {
      %18 = tpu.iota {dimensions = array<i32: 1>} : vector<4x256xi32>
      %c0 = arith.constant 0 : index
      %c0_10 = arith.constant 0 : index
      %19 = vector.load %arg3[%c0, %c0_10] : memref<4x256xf32, #tpu.memory_space<vmem>>, vector<4x256xf32>
      %c0_11 = arith.constant 0 : index
      %c0_12 = arith.constant 0 : index
      %20 = vector.load %arg4[%c0_11, %c0_12] : memref<4x256xf32, #tpu.memory_space<vmem>>, vector<4x256xf32>
      %c0_i32_13 = arith.constant 0 : i32
      %21 = arith.subi %8, %c0_i32_13 : i32
      %c0_i32_14 = arith.constant 0 : i32
      %c256_i32_15 = arith.constant 256 : i32
      %22 = arith.maxsi %c0_i32_14, %21 : i32
      %23 = arith.minsi %c256_i32_15, %22 : i32
      %24 = vector.broadcast %23 : i32 to vector<4x256xi32>
      %25 = arith.cmpi slt, %18, %24 : vector<4x256xi32>
      %cst = arith.constant 0.000000e+00 : f32
      %26 = vector.broadcast %cst : f32 to vector<4x256xf32>
      %27 = arith.select %25, %19, %26 : vector<4x256xi1>, vector<4x256xf32>
      %cst_16 = arith.constant 0.000000e+00 : f32
      %28 = vector.broadcast %cst_16 : f32 to vector<4x256xf32>
      %29 = arith.select %25, %20, %28 : vector<4x256xi1>, vector<4x256xf32>
      %c0_17 = arith.constant 0 : index
      %c0_18 = arith.constant 0 : index
      %c0_19 = arith.constant 0 : index
      %30 = vector.load %arg6[%c0_17, %c0_18, %c0_19] : memref<3x4x256xf32, #tpu.memory_space<vmem>>, vector<1x4x256xf32>
      %31 = vector.shape_cast %30 : vector<1x4x256xf32> to vector<4x256xf32>
      %32 = arith.mulf %27, %29 : vector<4x256xf32>
      %33 = arith.addf %31, %32 : vector<4x256xf32>
      %c0_20 = arith.constant 0 : index
      %c0_21 = arith.constant 0 : index
      %c0_22 = arith.constant 0 : index
      %34 = vector.load %arg6[%c0_20, %c0_21, %c0_22] : memref<3x4x256xf32, #tpu.memory_space<vmem>>, vector<1x4x256xf32>
      %35 = vector.shape_cast %34 : vector<1x4x256xf32> to vector<4x256xf32>
      %36 = vector.shape_cast %33 : vector<4x256xf32> to vector<1x4x256xf32>
      tpu.vector_store %arg6[%c0_20, %c0_21, %c0_22], %36 {strides = array<i32>} : memref<3x4x256xf32, #tpu.memory_space<vmem>>, vector<1x4x256xf32>,
      %c1 = arith.constant 1 : index
      %c0_23 = arith.constant 0 : index
      %c0_24 = arith.constant 0 : index
      %37 = vector.load %arg6[%c1, %c0_23, %c0_24] : memref<3x4x256xf32, #tpu.memory_space<vmem>>, vector<1x4x256xf32>
      %38 = vector.shape_cast %37 : vector<1x4x256xf32> to vector<4x256xf32>
      %39 = arith.mulf %27, %27 : vector<4x256xf32>
      %40 = arith.addf %38, %39 : vector<4x256xf32>
      %c1_25 = arith.constant 1 : index
      %c0_26 = arith.constant 0 : index
      %c0_27 = arith.constant 0 : index
      %41 = vector.load %arg6[%c1_25, %c0_26, %c0_27] : memref<3x4x256xf32, #tpu.memory_space<vmem>>, vector<1x4x256xf32>
      %42 = vector.shape_cast %41 : vector<1x4x256xf32> to vector<4x256xf32>
      %43 = vector.shape_cast %40 : vector<4x256xf32> to vector<1x4x256xf32>
      tpu.vector_store %arg6[%c1_25, %c0_26, %c0_27], %43 {strides = array<i32>} : memref<3x4x256xf32, #tpu.memory_space<vmem>>, vector<1x4x256xf32>,
      %c2 = arith.constant 2 : index
      %c0_28 = arith.constant 0 : index
      %c0_29 = arith.constant 0 : index
      %44 = vector.load %arg6[%c2, %c0_28, %c0_29] : memref<3x4x256xf32, #tpu.memory_space<vmem>>, vector<1x4x256xf32>
      %45 = vector.shape_cast %44 : vector<1x4x256xf32> to vector<4x256xf32>
      %46 = arith.mulf %29, %29 : vector<4x256xf32>
      %47 = arith.addf %45, %46 : vector<4x256xf32>
      %c2_30 = arith.constant 2 : index
      %c0_31 = arith.constant 0 : index
      %c0_32 = arith.constant 0 : index
      %48 = vector.load %arg6[%c2_30, %c0_31, %c0_32] : memref<3x4x256xf32, #tpu.memory_space<vmem>>, vector<1x4x256xf32>
      %49 = vector.shape_cast %48 : vector<1x4x256xf32> to vector<4x256xf32>
      %50 = vector.shape_cast %47 : vector<4x256xf32> to vector<1x4x256xf32>
      tpu.vector_store %arg6[%c2_30, %c0_31, %c0_32], %50 {strides = array<i32>} : memref<3x4x256xf32, #tpu.memory_space<vmem>>, vector<1x4x256xf32>,
    } else {
    }
    %c0_i32_8 = arith.constant 0 : i32
    %15 = arith.cmpi eq, %arg2, %c0_i32_8 : i32
    %16 = arith.extui %15 : i1 to i32
    %c0_i32_9 = arith.constant 0 : i32
    %17 = arith.cmpi ne, %16, %c0_i32_9 : i32
    scf.if %17 {
      %c0 = arith.constant 0 : index
      %c0_10 = arith.constant 0 : index
      %c0_11 = arith.constant 0 : index
      %18 = vector.load %arg6[%c0, %c0_10, %c0_11] : memref<3x4x256xf32, #tpu.memory_space<vmem>>, vector<3x4x256xf32>
      %c0_12 = arith.constant 0 : index
      %c0_13 = arith.constant 0 : index
      %c0_14 = arith.constant 0 : index
      %c0_15 = arith.constant 0 : index
      %c0_16 = arith.constant 0 : index
      %19 = vector.load %arg5[%c0_12, %c0_13, %c0_14, %c0_15, %c0_16] : memref<1x1x3x4x256xf32, #tpu.memory_space<vmem>>, vector<1x1x3x4x256xf32>
      %20 = vector.shape_cast %19 : vector<1x1x3x4x256xf32> to vector<3x4x256xf32>
      %21 = vector.shape_cast %18 : vector<3x4x256xf32> to vector<1x1x3x4x256xf32>
      tpu.vector_store %arg5[%c0_12, %c0_13, %c0_14, %c0_15, %c0_16], %21 {strides = array<i32>} : memref<1x1x3x4x256xf32, #tpu.memory_space<vmem>>, vector<1x1x3x4x256xf32>,
    } else {
    }
    return
  }
  func.func @transform_0(%arg0: i32, %arg1: i32, %arg2: i32) -> (i32, i32) {
    %c1_i32 = arith.constant 1 : i32
    %0 = arith.muli %arg0, %c1_i32 : i32
    %1 = arith.addi %0, %arg2 : i32
    %c0_i32 = arith.constant 0 : i32
    %2 = arith.minsi %1, %c0_i32 : i32
    %c0_i32_0 = arith.constant 0 : i32
    return %arg1, %2 : i32, i32
  }
  func.func @transform_1(%arg0: i32, %arg1: i32, %arg2: i32) -> (i32, i32) {
    %c1_i32 = arith.constant 1 : i32
    %0 = arith.muli %arg0, %c1_i32 : i32
    %1 = arith.addi %0, %arg2 : i32
    %c0_i32 = arith.constant 0 : i32
    %2 = arith.minsi %1, %c0_i32 : i32
    %c0_i32_0 = arith.constant 0 : i32
    return %arg1, %2 : i32, i32
  }
  func.func @transform_2(%arg0: i32, %arg1: i32, %arg2: i32) -> (i32, i32, i32, i32, i32) {
    %c0_i32 = arith.constant 0 : i32
    %c0_i32_0 = arith.constant 0 : i32
    %c0_i32_1 = arith.constant 0 : i32
    %c0_i32_2 = arith.constant 0 : i32
    return %arg0, %arg1, %c0_i32, %c0_i32_0, %c0_i32_1 : i32, i32, i32, i32, i32
  }
}

</mosaic_0001>

<bundles_post_ra>
// kernel: feature_loss.1
= control target key start
LH: loop header
LB: loop body
LE: loop exit
PB: predicated region body
PF: predicated region fallthrough
CT: control target
= control target key end

     0   :  { %s219_s0 = inlined_call_operand.vmem [shape: f32[4,256], index: 0, kind: input, shape index: {}]   ;;  %s220_s1 = inlined_call_operand.vmem [shape: f32[4,256], index: 1, kind: input, shape index: {}]   ;;  %s221_s2 = inlined_call_operand.vmem [shape: f32[1,1,3,4,256], index: 2, kind: output, shape index: {}]  }
   0x1   :  { %v93_v0 = vld [vmem:[%s219_s0] sm:$0xff] }
   0x2   :  { %v94_v1 = vld [vmem:[%s220_s1] sm:$0xff]  ;;  %v101_v3 = vmul.f32 %v93_v0, %v93_v0 }
   0x3   :  { %v96_v2 = vmul.f32 %v94_v1, %v93_v0  ;;  %v106_v4 = vmul.f32 %v94_v1, %v94_v1 }
   0x4   :  { %171 = vst [vmem:[%s221_s2 + $0x8] sm:$0xff] %v101_v3 }
   0x5   :  { %170 = vst [vmem:[%s221_s2] sm:$0xff] %v96_v2  ;;  %172 = vst [vmem:[%s221_s2 + $0x10] sm:$0xff] %v106_v4 }

</bundles_post_ra>
